<compile_context>
chip_gen: v7x
topology: tpu7x:2x2x1
jax: 0.10.0
libtpu: 0.0.40
codegen_flags: <defaults>
</compile_context>

<pallas_src>
import jax
import jax.numpy as jnp
from jax.experimental import pallas as pl
from jax.experimental.pallas import tpu as pltpu


# ---------------------------------------------------------------------------
# Small helpers
# ---------------------------------------------------------------------------
def _round_up(x, m):
    return (x + m - 1) // m * m


def _cdiv(a, b):
    return (a + b - 1) // b


def _vmem_cap_bytes():
    """Generation-aware VMEM budget (leave ~25% headroom under physical)."""
    try:
        cap = int(pltpu.get_tpu_info().vmem_capacity_bytes)
    except Exception:
        cap = 64 << 20  # conservative: v7x has 64 MiB per TensorCore
    return cap * 3 // 4


def _pick_tile(dim, candidates=(512, 256, 128)):
    """Lane-direction tile: full dim if small, else the candidate minimizing padding."""
    if dim <= candidates[-1]:
        return dim  # block == full array dim is exempt from (8,128) divisibility
    best_t, best_pad = None, None
    for t in candidates:
        pad = _round_up(dim, t) - dim
        if best_pad is None or pad < best_pad:
            best_t, best_pad = t, pad
    return best_t


def _pick_tm(m, sub, pref=512):
    """Sublane-direction (M) tile; dtype-aware multiple, >=2 tiles for megacore."""
    if m <= sub:
        return m  # full-dim block
    tm = min(pref, _round_up(m, sub))
    # v7x has 2 TensorCores sharded over the "parallel" grid axes: make sure
    # there are at least 2 M tiles so neither core sits idle.
    if _cdiv(m, tm) < 2:
        tm = _round_up(_cdiv(m, 2), sub)
    return tm


# ---------------------------------------------------------------------------
# Kernels
# ---------------------------------------------------------------------------
def _linear_resident_kernel(x_ref, wt_ref, o_ref):
    # x_ref: (tm, K) bf16, wt_ref: (K, N) bf16 (VMEM-resident, constant index_map),
    # o_ref: (tm, N) f32.  Single MXU dot over the full K.
    o_ref[...] = jnp.dot(
        x_ref[...], wt_ref[...], preferred_element_type=jnp.float32
    ).astype(o_ref.dtype)


def _linear_tiled_kernel(x_ref, wt_ref, o_ref):
    # x_ref: (tm, tk) bf16, wt_ref: (tk, tn) bf16, o_ref: (tm, tn) f32.
    # o_ref is K-invariant (same block for every k), so accumulate into it
    # directly -- no scratch accumulator and no epilogue copy.
    kk = pl.program_id(2)

    @pl.when(kk == 0)
    def _():
        o_ref[...] = jnp.zeros_like(o_ref)

    o_ref[...] += jnp.dot(
        x_ref[...], wt_ref[...], preferred_element_type=jnp.float32
    )


# ---------------------------------------------------------------------------
# Planning (done once per layer, in __init__) + per-call wrapper
# ---------------------------------------------------------------------------
_RESIDENT_WT_BYTES = 8 << 20   # weight stays VMEM-resident at/below this size
_RESIDENT_MAX_K = 4096
_RESIDENT_MAX_N = 2048


def _make_weight_plan(k, n, compute_dtype, force_tiled=False):
    compute_dtype = jnp.dtype(compute_dtype)
    itemsize = compute_dtype.itemsize
    resident = (
        not force_tiled
        and k * n * itemsize <= _RESIDENT_WT_BYTES
        and k <= _RESIDENT_MAX_K
        and n <= _RESIDENT_MAX_N
    )
    if resident:
        tk, tn = k, n  # one full-array weight block, DMA'd into VMEM once
    else:
        tk = _pick_tile(k)
        tn = _pick_tile(n)
    return dict(
        k=k, n=n,
        tk=tk, tn=tn,
        kp=_round_up(k, tk), np=_round_up(n, tn),
        resident=resident,
        compute_dtype=compute_dtype,
        sub=32 // itemsize,  # sublane multiple: 8 (f32) / 16 (bf16) / 32 (int8)
    )


def _linear_2d(x2d, wt, plan):
    """y2d = x2d @ wt.  x2d: (M, K) compute_dtype, wt: (Kp, Np) compute_dtype."""
    m, k = x2d.shape
    n = plan["n"]
    kp, np_, tk, tn = plan["kp"], plan["np"], plan["tk"], plan["tn"]
    in_itemsize = plan["compute_dtype"].itemsize

    tm = _pick_tm(m, plan["sub"])
    mp = _round_up(m, tm)

    # Weight padding was hoisted to __init__; only pad x when actually unaligned.
    if (mp, kp) != (m, k):
        x2d = jnp.pad(x2d, ((0, mp - m), (0, kp - k)))

    cost = pl.CostEstimate(
        flops=2 * mp * np_ * kp,
        transcendentals=0,
        bytes_accessed=(mp * kp + kp * np_) * in_itemsize + mp * np_ * 4,
    )

    if plan["resident"]:
        grid = (mp // tm,)
        in_specs = [
            pl.BlockSpec((tm, kp), lambda i: (i, 0)),
            pl.BlockSpec((kp, np_), lambda i: (0, 0)),  # constant -> DMA'd once
        ]
        out_specs = pl.BlockSpec((tm, np_), lambda i: (i, 0))
        kernel = _linear_resident_kernel
        semantics = ("parallel",)
        need = 2 * (tm * kp + kp * np_) * in_itemsize + 2 * tm * np_ * 4
    else:
        grid = (mp // tm, np_ // tn, kp // tk)
        in_specs = [
            pl.BlockSpec((tm, tk), lambda i, j, kk: (i, kk)),
            pl.BlockSpec((tk, tn), lambda i, j, kk: (kk, j)),
        ]
        out_specs = pl.BlockSpec((tm, tn), lambda i, j, kk: (i, j))
        kernel = _linear_tiled_kernel
        semantics = ("parallel", "parallel", "arbitrary")
        need = 2 * (tm * tk + tk * tn) * in_itemsize + 2 * tm * tn * 4

    cap = _vmem_cap_bytes()
    vmem_limit = int(min(cap, max(need + (8 << 20), 32 << 20)))

    y2d = pl.pallas_call(
        kernel,
        out_shape=jax.ShapeDtypeStruct((mp, np_), jnp.float32),
        grid_spec=pltpu.PrefetchScalarGridSpec(
            num_scalar_prefetch=0,
            grid=grid,
            in_specs=in_specs,
            out_specs=out_specs,
        ),
        compiler_params=pltpu.CompilerParams(
            dimension_semantics=semantics,
            vmem_limit_bytes=vmem_limit,
        ),
        cost_estimate=cost,
    )(x2d, wt)

    if (mp, np_) != (m, n):
        y2d = y2d[:m, :n]
    return y2d


def linear_forward(x, wt, plan):
    """y = x @ w.T.  x: [batch, *, in_num]; wt pre-transposed/cast/padded."""
    k, n = plan["k"], plan["n"]
    assert x.shape[-1] == k
    lead = x.shape[:-1]
    m = 1
    for d in lead:
        m *= d
    # Cast activations to the MXU-native compute dtype (bf16 by default);
    # accumulation stays in f32 inside the kernel, output is f32.
    x2d = x.reshape(m, k).astype(plan["compute_dtype"])
    y2d = _linear_2d(x2d, wt, plan)
    return y2d.reshape(*lead, n)


class Linear:
    """Pallas equivalent of SpikingFlow connection.Linear (no bias)."""

    def __init__(self, in_num, out_num, key, dtype=jnp.float32,
                 compute_dtype=jnp.bfloat16, force_tiled=False):
        # torch.rand(size=[out_num, in_num]) / 128  ->  U[0,1)/128
        self.in_num = in_num
        self.out_num = out_num
        self.w = jax.random.uniform(key, (out_num, in_num), dtype=dtype) / 128.0

        # Plan weight tiling once (resident vs tiled), then hoist the transpose,
        # compute-dtype cast and any tile padding out of the forward pass.
        # (An int8 spike path would double v5e/v6e MXU rate again, but is not
        #  enabled: v7x's MXU has no int support.)
        self._plan = _make_weight_plan(in_num, out_num, compute_dtype,
                                       force_tiled=force_tiled)
        wt = jnp.transpose(self.w).astype(self._plan["compute_dtype"])
        kp, np_ = self._plan["kp"], self._plan["np"]
        if (kp, np_) != (in_num, out_num):
            wt = jnp.pad(wt, ((0, kp - in_num), (0, np_ - out_num)))
        self.wt = wt  # (kp, np_) compute_dtype

    def __call__(self, x):
        return linear_forward(x, self.wt, self._plan)

    def reset(self):
        # Stateless synapse; nothing to reset.
        pass


# ---------------------------------------------------------------------------
# Self-test
# ---------------------------------------------------------------------------
def _ref(x, w):
    """Reference with the same operand precision as the kernel (bf16 operands,
    f32 accumulation), computed with plain XLA ops."""
    xb = x.astype(jnp.bfloat16).astype(jnp.float32)
    wb = w.astype(jnp.bfloat16).astype(jnp.float32)
    return xb @ wb.T


if __name__ == "__main__":
    key = jax.random.PRNGKey(0)
    k_w, k_x, k_w2, k_x2, k_w3, k_x3 = jax.random.split(key, 6)

    # Small SNN-like layer: x [batch=2, mid=4, in=32] -> y [2, 4, 64].
    # Exercises full-dim blocks (no rounding of K=32 / N=64 up to 128).
    layer = Linear(32, 64, k_w)
    x = jax.random.normal(k_x, (2, 4, 32), dtype=jnp.float32)
    y = jax.block_until_ready(layer(x))
    assert y.shape == (2, 4, 64)
    assert jnp.allclose(y, _ref(x, layer.w), atol=1e-4, rtol=1e-4)

    # Larger shape: resident-weight fast path, multiple M tiles (megacore split).
    big = Linear(1024, 512, k_w2)
    xb = jax.random.normal(k_x2, (4, 96, 1024), dtype=jnp.float32)
    yb = jax.block_until_ready(big(xb))
    assert yb.shape == (4, 96, 512)
    assert jnp.allclose(yb, _ref(xb, big.w), atol=1e-3, rtol=1e-3)

    # Force the general tiled path: grid (2, 3, 2), K reduction accumulated
    # directly in the K-invariant f32 output block.
    tiled = Linear(1024, 384, k_w3, force_tiled=True)
    xt = jax.random.normal(k_x3, (4, 96, 1024), dtype=jnp.float32)
    yt = jax.block_until_ready(tiled(xt))
    assert yt.shape == (4, 96, 384)
    assert jnp.allclose(yt, _ref(xt, tiled.w), atol=1e-3, rtol=1e-3)

    print("KERNEL_OK")
</pallas_src>

<mosaic_0001>
module attributes {stable_mosaic.version = 11 : i64} {
  func.func @_linear_resident_kernel(%arg0: i32, %arg1: memref<8x32xbf16, #tpu.memory_space<vmem>>, %arg2: memref<32x64xbf16, #tpu.memory_space<vmem>>, %arg3: memref<8x64xf32, #tpu.memory_space<vmem>>) attributes {dimension_semantics = [#tpu.dimension_semantics<parallel>], iteration_bounds = array<i64: 1>, scalar_prefetch = 0 : i64, scratch_operands = 0 : i64, tpu.core_type = #tpu.core_type<tc>, window_params = [{transform_indices = @transform_0, window_bounds = array<i64: 8, 32>}, {pipeline_mode = #tpu.pipeline_mode<synchronous>, transform_indices = @transform_1, window_bounds = array<i64: 32, 64>}, {transform_indices = @transform_2, window_bounds = array<i64: 8, 64>}]} {
    %c0 = arith.constant 0 : index
    %c0_0 = arith.constant 0 : index
    %0 = vector.load %arg1[%c0, %c0_0] : memref<8x32xbf16, #tpu.memory_space<vmem>>, vector<8x32xbf16>
    %c0_1 = arith.constant 0 : index
    %c0_2 = arith.constant 0 : index
    %1 = vector.load %arg2[%c0_1, %c0_2] : memref<32x64xbf16, #tpu.memory_space<vmem>>, vector<32x64xbf16>
    %cst = arith.constant dense<0.000000e+00> : vector<8x64xf32>
    %2 = tpu.matmul %0, %1, %cst {dimension_numbers = #tpu.dot_dimension_numbers<[1], [0], [0], [1], [0, 0, 1, 1], [], []>} : vector<8x32xbf16>, vector<32x64xbf16>, vector<8x64xf32> -> vector<8x64xf32>
    %c0_3 = arith.constant 0 : index
    %c0_4 = arith.constant 0 : index
    %3 = vector.load %arg3[%c0_3, %c0_4] : memref<8x64xf32, #tpu.memory_space<vmem>>, vector<8x64xf32>
    tpu.vector_store %arg3[%c0_3, %c0_4], %2 {strides = array<i32>} : memref<8x64xf32, #tpu.memory_space<vmem>>, vector<8x64xf32>,
    return
  }
  func.func @transform_0(%arg0: i32) -> (i32, i32) {
    %c0_i32 = arith.constant 0 : i32
    %c0_i32_0 = arith.constant 0 : i32
    return %arg0, %c0_i32 : i32, i32
  }
  func.func @transform_1(%arg0: i32) -> (i32, i32) {
    %c0_i32 = arith.constant 0 : i32
    %c0_i32_0 = arith.constant 0 : i32
    %c0_i32_1 = arith.constant 0 : i32
    return %c0_i32, %c0_i32_0 : i32, i32
  }
  func.func @transform_2(%arg0: i32) -> (i32, i32) {
    %c0_i32 = arith.constant 0 : i32
    %c0_i32_0 = arith.constant 0 : i32
    return %arg0, %c0_i32 : i32, i32
  }
}

</mosaic_0001>

<bundles_post_ra>
// kernel: tpu_custom_call.1
= control target key start
LH: loop header
LB: loop body
LE: loop exit
PB: predicated region body
PF: predicated region fallthrough
CT: control target
= control target key end

     0   :  { %7 = vsyncpa [#allocation3], 0  ;;  %s278_s0 = inlined_call_operand.hbm [shape: bf16[8,32], index: 0, kind: input, shape index: {}]   ;;  %s279_s1 = inlined_call_operand.hbm [shape: bf16[32,64], index: 1, kind: input, shape index: {}]   ;;  %s280_s2 = inlined_call_operand.hbm [shape: f32[8,64], index: 2, kind: output, shape index: {}]  }
   0x1   :  { %8 = vsyncpa [#allocation6], 0 }
   0x2   :  { %9 = vsyncpa [#allocation4], 0  ;;  %s213_s9 = smov [#allocation2]   ;;  %s214_s11 = smov [#allocation5]  }
   0x3   :  { %s16_s10 = sshll.u32 %s213_s9, 4  ;;  %s25_s12 = sshll.u32 %s214_s11, 4  ;;  %s17_s10 = int_to_ptr.vmem [resolvable:$true] %s16_s10  ;;  %s235_s12 = int_to_ptr.vmem [resolvable:$true] %s25_s12 }
   0x4   :  { %s141_s15 = scalar_lea.hbm %s278_s0, 64 }
   0x5   :  { %p142_p0 = scmp.ne.s32.totalorder %s278_s0, %s141_s15  ;;  %p145_p1 = scmp.lt.u32.totalorder %s141_s15, %s278_s0 }
   0x7   :  { %p147_p2 = pnand %p145_p1, %p142_p0 }
   0x9   :  { %150 = shalt.err (!%p147_p2)
}
   0xa   :  { %s151_s20 = scalar_lea.vmem %s17_s10, 64  ;;  %p156_p4 = scmp.lt.s32.totalorder %s17_s10, %s17_s10 }
   0xb   :  { %p152_p3 = scmp.ne.s32.totalorder %s17_s10, %s151_s20  ;;  %p157_p5 = scmp.lt.s32.totalorder %s151_s20, %s151_s20 }
   0xd   :  { %p158_p6 = por %p157_p5, %p156_p4 }
   0xf   :  { %p159_p7 = pnand %p158_p6, %p152_p3 }
  0x11   :  { %162 = shalt.err (!%p159_p7)
}
  0x12   :  { %19 = dma.hbm_to_vmem [thread:$0]  %s278_s0, 64, %s17_s10, [#allocation3]  }
  0x13   :  { %s163_s25 = scalar_lea.hbm %s279_s1, 256 }
  0x14   :  { %p164_p8 = scmp.ne.s32.totalorder %s279_s1, %s163_s25  ;;  %p167_p9 = scmp.lt.u32.totalorder %s163_s25, %s279_s1 }
  0x16   :  { %p169_p10 = pnand %p167_p9, %p164_p8 }
  0x18   :  { %172 = shalt.err (!%p169_p10)
}
  0x19   :  { %s173_s30 = scalar_lea.vmem %s235_s12, 256  ;;  %p178_p12 = scmp.lt.s32.totalorder %s235_s12, %s235_s12 }
  0x1a   :  { %p174_p11 = scmp.ne.s32.totalorder %s235_s12, %s173_s30  ;;  %p179_p13 = scmp.lt.s32.totalorder %s173_s30, %s173_s30 }
  0x1c   :  { %p180_p0 = por %p179_p13, %p178_p12 }
  0x1e   :  { %p181_p1 = pnand %p180_p0, %p174_p11 }
  0x20   :  { %184 = shalt.err (!%p181_p1)
}
  0x21   :  { %s215_s0 = smov 64   ;;  %s216_s3 = smov 4  }
  0x22   :  { %31 = dma.hbm_to_vmem [thread:$0]  %s279_s1, 256, %s235_s12, [#allocation6], %s215_s0, %s215_s0, %s216_s3  }
  0x23   :  { %207 = dma.done.wait [#allocation3], 64  }
  0x24   :  { %208 = vsyncadd [#allocation3], 4294967232 }
  0x25   :  { %209 = dma.done.wait [#allocation6], 256  }
  0x26   :  { %210 = vsyncadd [#allocation6], 4294967040  ;;  %v217_v0 = vmov 0.0   ;;  %vm218_vm0 = vmmov 0   ;;  %v139_v1 = vld [vmem:[#allocation5] sm:$0xff]   ;;  %v140_v2 = vld [vmem:[#allocation5 + $0x8] sm:$0xff]  }
  0x27   :  { %124 = vmatprep.subr.bf16.mxu0 %v217_v0  ;;  %128 = vmatprep.mubr.msk.bf16.mxu0 %vm218_vm0, %v217_v0  ;;  %v39_v3 = vld [vmem:[#allocation2] sm:$0xf]  ;;  %vm56_vm1 = vcmask 261120   ;;  %s219_s6 = smov [#allocation7]   ;;  %vm100_vm2 = vcmask 523264  }
  0x28   :  { %125 = vmatpush3.bf16.msra.mxu0 %v139_v1  ;;  %s108_s7 = sshll.u32 %s219_s6, 4  ;;  %s109_s7 = int_to_ptr.vmem [resolvable:$true] %s108_s7 }
  0x29   :  { %126 = vmatprep.subr.bf16.mxu0 %v217_v0  ;;  %s185_s1 = scalar_lea.vmem %s109_s7, 128  ;;  %p190_p3 = scmp.lt.s32.totalorder %s109_s7, %s109_s7 }
  0x2a   :  { %p186_p2 = scmp.ne.s32.totalorder %s109_s7, %s185_s1  ;;  %p191_p4 = scmp.lt.s32.totalorder %s185_s1, %s185_s1 }
  0x2c   :  { %127 = vmatpush3.bf16.msra.mxu0 %v140_v2  ;;  %p192_p5 = por %p191_p4, %p190_p3 }
  0x2e   :  { %p193_p6 = pnand %p192_p5, %p186_p2 }
  0x2f   :  { %129 = vmatmul.mubr.msk.bf16.vlgmr.msra.gmra.mrb[0].mxu0 %vm56_vm1, %v39_v3 }
 0x102   :  { %v94_v4 = vpop.f32.mrb[0].mxu0 }
 0x103   :  { %v130_v5 = vpop.f32.mrb[1].mxu0  ;;  %101 = vst.msk [vmem:[#allocation7] sm:$0xff] %vm100_vm2, %v94_v4 }
 0x104   :  { %v97_v6 = vpop.f32.mrb[2].mxu0 }
 0x105   :  { %196 = shalt.err (!%p193_p6)
}
 0x106   :  { %s197_s10 = scalar_lea.hbm %s280_s2, 128 }
 0x107   :  { %p198_p7 = scmp.ne.s32.totalorder %s280_s2, %s197_s10  ;;  %p201_p8 = scmp.lt.u32.totalorder %s197_s10, %s280_s2 }
 0x109   :  { %p203_p9 = pnand %p201_p8, %p198_p7 }
 0x10b   :  { %206 = shalt.err (!%p203_p9)
}
 0x10c   :  { %111 = dma.vmem_to_hbm [thread:$0]  %s109_s7, 128, %s280_s2, [#allocation4]   ;;  %v131_v7 = vpop.f32.mrb[3].mxu0 }
 0x10d   :  { %211 = dma.done.wait [#allocation4], 128  }
 0x10e   :  { %212 = vsyncadd [#allocation4], 4294967168 }
 0x10f   :  { %115 = vsyncpa [#allocation3], 1 }
 0x110   :  { %116 = vsyncpa [#allocation6], 1 }
 0x111   :  { %117 = vsyncpa [#allocation4], 1 }

</bundles_post_ra>
